<compile_context>
chip_gen: v5e
topology: v5e:2x2
jax: 0.10.0
libtpu: 0.0.40
codegen_flags: <defaults>
</compile_context>

<pallas_src>
import functools

import jax
import jax.numpy as jnp
from jax.experimental import pallas as pl
from jax.experimental.pallas import tpu as pltpu


def _network_kernel(x_ref, bt_ref, a_ref, o_ref):
    # (TN, d) @ (d, m) on the MXU, f32 accumulation.
    h = jnp.dot(x_ref[...], bt_ref[...], preferred_element_type=jnp.float32)
    h = jnp.maximum(h, 0.0)  # ReLU on the VPU
    # Final contraction against `a` as (TN, m) @ (m, 1) -> (TN, 1) on the MXU.
    o = jnp.dot(h, a_ref[...], preferred_element_type=jnp.float32)
    o_ref[...] = o.astype(o_ref.dtype)


def _round_up(x, k):
    return (x + k - 1) // k * k


def network_forward(x, B, a, *, mf=False):
    """x: (N, d) f32, B: (m, d) f32, a: (m,) f32  ->  (N,) f32 (scalar if N==1)."""
    N, d = x.shape
    m, d2 = B.shape
    assert d == d2 and a.shape == (m,)

    # Fold the optional 1/m scale into the resident `a` vector; present it as a
    # column so the final contraction rides the MXU.
    a_col = (a / float(m) if mf else a).reshape(m, 1).astype(jnp.float32)
    # One-time transpose in the wrapper so the kernel never transposes B.
    B_t = B.T.astype(jnp.float32)  # (d, m)

    # Pick a batch tile: multiple of 8 (sublane alignment), capped at 512 rows.
    n_pad8 = _round_up(N, 8)
    TN = min(512, n_pad8)
    N_pad = _round_up(n_pad8, TN)
    if N_pad != N:
        x = jnp.pad(x, ((0, N_pad - N), (0, 0)))
    x = x.astype(jnp.float32)

    grid = (N_pad // TN,)

    cost = pl.CostEstimate(
        flops=2 * N_pad * m * d + 2 * N_pad * m,
        transcendentals=0,
        bytes_accessed=4 * (N_pad * d + m * d + m + N_pad),
    )

    out = pl.pallas_call(
        _network_kernel,
        out_shape=jax.ShapeDtypeStruct((N_pad, 1), jnp.float32),
        grid_spec=pltpu.PrefetchScalarGridSpec(
            num_scalar_prefetch=0,
            grid=grid,
            in_specs=[
                pl.BlockSpec((TN, d), lambda i: (i, 0)),   # streamed x tiles
                pl.BlockSpec((d, m), lambda i: (0, 0)),    # resident B^T
                pl.BlockSpec((m, 1), lambda i: (0, 0)),    # resident a column
            ],
            out_specs=pl.BlockSpec((TN, 1), lambda i: (i, 0)),
        ),
        compiler_params=pltpu.CompilerParams(
            dimension_semantics=("parallel",),
        ),
        cost_estimate=cost,
    )(x, B_t, a_col)

    out = out[:N, 0]          # (N,)
    return jnp.squeeze(out)   # mimic torch's o.squeeze(): scalar if N == 1


if __name__ == "__main__":
    # Small shapes consistent with the module: d = input dim, m = hidden width.
    N, d, m = 8, 32, 64
    mf = True

    key = jax.random.PRNGKey(0)
    kx, kb, ka = jax.random.split(key, 3)

    x = jax.random.normal(kx, (N, d), dtype=jnp.float32)

    # Deterministic parameter init following __init__ shapes:
    #   B: (m, d) row-normalized gaussian (as in the module)
    #   a: (m,)   -- module uses zeros; small randoms here so the hot path
    #               (matmul + relu + contraction) is actually exercised.
    B = jax.random.normal(kb, (m, d), dtype=jnp.float32)
    B = B / jnp.linalg.norm(B, axis=1, keepdims=True)
    a = 0.1 * jax.random.normal(ka, (m,), dtype=jnp.float32)

    out = jax.block_until_ready(network_forward(x, B, a, mf=mf))

    # Pure-JAX reference for correctness.
    ref = jnp.maximum(x @ B.T, 0.0) @ a
    if mf:
        ref = ref / m
    assert out.shape == (N,), out.shape
    assert jnp.allclose(out, ref, atol=1e-5, rtol=1e-5), (out, ref)

    print("KERNEL_OK")
</pallas_src>

<mosaic_0001>
module attributes {stable_mosaic.version = 11 : i64} {
  func.func @_network_kernel(%arg0: i32, %arg1: memref<8x32xf32, #tpu.memory_space<vmem>>, %arg2: memref<32x64xf32, #tpu.memory_space<vmem>>, %arg3: memref<64x1xf32, #tpu.memory_space<vmem>>, %arg4: memref<8x1xf32, #tpu.memory_space<vmem>>) attributes {dimension_semantics = [#tpu.dimension_semantics<parallel>], iteration_bounds = array<i64: 1>, scalar_prefetch = 0 : i64, scratch_operands = 0 : i64, tpu.core_type = #tpu.core_type<tc>, window_params = [{transform_indices = @transform_0, window_bounds = array<i64: 8, 32>}, {pipeline_mode = #tpu.pipeline_mode<synchronous>, transform_indices = @transform_1, window_bounds = array<i64: 32, 64>}, {pipeline_mode = #tpu.pipeline_mode<synchronous>, transform_indices = @transform_2, window_bounds = array<i64: 64, 1>}, {transform_indices = @transform_3, window_bounds = array<i64: 8, 1>}]} {
    %c0 = arith.constant 0 : index
    %c0_0 = arith.constant 0 : index
    %0 = vector.load %arg1[%c0, %c0_0] : memref<8x32xf32, #tpu.memory_space<vmem>>, vector<8x32xf32>
    %c0_1 = arith.constant 0 : index
    %c0_2 = arith.constant 0 : index
    %1 = vector.load %arg2[%c0_1, %c0_2] : memref<32x64xf32, #tpu.memory_space<vmem>>, vector<32x64xf32>
    %cst = arith.constant dense<0.000000e+00> : vector<8x64xf32>
    %2 = tpu.matmul %0, %1, %cst {dimension_numbers = #tpu.dot_dimension_numbers<[1], [0], [0], [1], [0, 0, 1, 1], [], []>} : vector<8x32xf32>, vector<32x64xf32>, vector<8x64xf32> -> vector<8x64xf32>
    %cst_3 = arith.constant 0.000000e+00 : f32
    %3 = vector.broadcast %cst_3 : f32 to vector<8x64xf32>
    %4 = arith.maximumf %2, %3 : vector<8x64xf32>
    %c0_4 = arith.constant 0 : index
    %c0_5 = arith.constant 0 : index
    %5 = vector.load %arg3[%c0_4, %c0_5] : memref<64x1xf32, #tpu.memory_space<vmem>>, vector<64x1xf32>
    %cst_6 = arith.constant dense<0.000000e+00> : vector<8x1xf32>
    %6 = tpu.matmul %4, %5, %cst_6 {dimension_numbers = #tpu.dot_dimension_numbers<[1], [0], [0], [1], [0, 0, 1, 1], [], []>} : vector<8x64xf32>, vector<64x1xf32>, vector<8x1xf32> -> vector<8x1xf32>
    %c0_7 = arith.constant 0 : index
    %c0_8 = arith.constant 0 : index
    %7 = vector.load %arg4[%c0_7, %c0_8] : memref<8x1xf32, #tpu.memory_space<vmem>>, vector<8x1xf32>
    tpu.vector_store %arg4[%c0_7, %c0_8], %6 {strides = array<i32>} : memref<8x1xf32, #tpu.memory_space<vmem>>, vector<8x1xf32>,
    return
  }
  func.func @transform_0(%arg0: i32) -> (i32, i32) {
    %c0_i32 = arith.constant 0 : i32
    %c0_i32_0 = arith.constant 0 : i32
    return %arg0, %c0_i32 : i32, i32
  }
  func.func @transform_1(%arg0: i32) -> (i32, i32) {
    %c0_i32 = arith.constant 0 : i32
    %c0_i32_0 = arith.constant 0 : i32
    %c0_i32_1 = arith.constant 0 : i32
    return %c0_i32, %c0_i32_0 : i32, i32
  }
  func.func @transform_2(%arg0: i32) -> (i32, i32) {
    %c0_i32 = arith.constant 0 : i32
    %c0_i32_0 = arith.constant 0 : i32
    %c0_i32_1 = arith.constant 0 : i32
    return %c0_i32, %c0_i32_0 : i32, i32
  }
  func.func @transform_3(%arg0: i32) -> (i32, i32) {
    %c0_i32 = arith.constant 0 : i32
    %c0_i32_0 = arith.constant 0 : i32
    return %arg0, %c0_i32 : i32, i32
  }
}

</mosaic_0001>

<bundles_post_ra>
// kernel: tpu_custom_call.1
= control target key start
LH: loop header
LB: loop body
LE: loop exit
PB: predicated region body
PF: predicated region fallthrough
CT: control target
= control target key end

     0   :  { %vm19_vm0 = vcmask 261120   ;;  %vm52_vm1 = vcmask 523264   ;;  %vm76_vm2 = vcmask 7168   ;;  %s146_s1 = inlined_call_operand.vmem [shape: f32[32,64], index: 1, kind: input, shape index: {}]   ;;  %s147_s2 = inlined_call_operand.vmem [shape: f32[64,1], index: 2, kind: input, shape index: {}]   ;;  %s148_s0 = inlined_call_operand.vmem [shape: f32[8,32], index: 0, kind: input, shape index: {}]   ;;  %s149_s3 = inlined_call_operand.vmem [shape: f32[8,1], index: 3, kind: output, shape index: {}]  }
   0x1   :  { %v18_v0 = vld [vmem:[%s146_s1 + $0x18] sm:$0xff]  ;;  %v17_v1 = vld [vmem:[%s146_s1 + $0x10] sm:$0xff]  ;;  %v16_v3 = vld [vmem:[%s146_s1 + $0x8] sm:$0xff] }
   0x2   :  { %35 = vmatpush.msra.mxu0 %v18_v0  ;;  %v51_v2 = vld [vmem:[%s147_s2 + $0x38] sm:$0xff]  ;;  %v50_v4 = vld [vmem:[%s147_s2 + $0x30] sm:$0xff]  ;;  %v49_v5 = vld [vmem:[%s147_s2 + $0x28] sm:$0xff] }
   0x3   :  { %64 = vmatpush.msra.mxu1 %v51_v2  ;;  %v15_v6 = vld [vmem:[%s146_s1] sm:$0xff]  ;;  %v47_v9 = vld [vmem:[%s147_s2 + $0x18] sm:$0xff]  ;;  %v46_v10 = vld [vmem:[%s147_s2 + $0x10] sm:$0xff] }
   0x4   :  { %36 = vmatpush.msra.mxu0 %v17_v1  ;;  %v14_v7 = vld [vmem:[%s148_s0] sm:$0xff]  ;;  %v45_v11 = vld [vmem:[%s147_s2 + $0x8] sm:$0xff] }
   0x5   :  { %65 = vmatpush.msra.mxu1 %v50_v4  ;;  %v48_v8 = vld [vmem:[%s147_s2 + $0x20] sm:$0xff] }
   0x6   :  { %37 = vmatpush.msra.mxu0 %v16_v3  ;;  %v44_v12 = vld [vmem:[%s147_s2] sm:$0xff] }
   0x7   :  { %66 = vmatpush.msra.mxu1 %v49_v5 }
   0x8   :  { %38 = vmatpush.msra.mxu0 %v15_v6 }
   0x9   :  { %82 = vmatmul.msk.f32.vlgmr.msra.gmra.mxu0 %vm19_vm0, %v14_v7  ;;  %67 = vmatpush.msra.mxu1 %v48_v8 }
   0xb   :  { %68 = vmatpush.msra.mxu1 %v47_v9 }
   0xd   :  { %69 = vmatpush.msra.mxu1 %v46_v10 }
   0xf   :  { %70 = vmatpush.msra.mxu1 %v45_v11 }
  0x11   :  { %71 = vmatpush.msra.mxu1 %v44_v12 }
  0x86   :  { %v40_v13 = vpop.f32.mrf.mxu0 }
  0x87   :  { %v43_v14 = vmax.f32 %v40_v13, 0.0 }
  0x89   :  { %83 = vmatmul.msk.f32.vlgmr.msra.gmra.mxu1 %vm52_vm1, %v43_v14 }
 0x106   :  { %v73_v15 = vpop.f32.mrf.mxu1 }
 0x107   :  { %77 = vst.msk [vmem:[%s149_s3] sm:$0xff] %vm76_vm2, %v73_v15 }

</bundles_post_ra>
